<compile_context>
chip_gen: v6e
topology: v6e:2x2x1
jax: 0.10.0
libtpu: 0.0.40
codegen_flags: <defaults>
</compile_context>

<pallas_src>
import functools

import jax
import jax.numpy as jnp
from jax.experimental import pallas as pl
from jax.experimental.pallas import tpu as pltpu

LANE = 128            # lane (last-dim) quantum -> dense vst on outputs / MXU lanes
SUBLANE_BF16 = 16     # bf16 sublane packing quantum (one bf16 vreg holds 16x128)
TM_MAX = 512          # max batch rows per grid step
VMEM_BUDGET = 56 * 2**20   # conservative cap: fits v7x 64 MiB/TC with headroom
VMEM_FLOOR = 32 * 2**20


def _round_up(n, m):
    return ((n + m - 1) // m) * m


def mlp_kernel(*refs, num_layers, row_chunks):
    """Fused (Linear -> ReLU)*(L-1) -> Linear over one (TM, Din_p) batch tile.

    refs = (x_ref, w1, b1, ..., wL, bL, o_ref).  Weights are bf16 (in, out) with the
    output dims padded to 128; biases are f32 (1, out).  The MXU accumulates in f32;
    activations are re-cast to bf16 between layers.  `row_chunks` statically splits the
    tile rows into independent halves so the scheduler can overlap one half's matmul
    with the other half's bias/ReLU/cast epilogue.
    """
    x_ref, o_ref = refs[0], refs[-1]
    wb = refs[1:-1]
    rows = x_ref.shape[0]
    rc = rows // row_chunks
    for c in range(row_chunks):
        r0 = c * rc
        # Cast in-kernel: avoids materializing a padded bf16 copy of x in HBM.
        h = x_ref[r0:r0 + rc, :].astype(jnp.bfloat16)
        for l in range(num_layers):
            w_ref, b_ref = wb[2 * l], wb[2 * l + 1]
            acc = jnp.dot(h, w_ref[...], preferred_element_type=jnp.float32) + b_ref[...]
            if l < num_layers - 1:
                h = jnp.maximum(acc, 0.0).astype(jnp.bfloat16)
            else:
                o_ref[r0:r0 + rc, :] = acc.astype(o_ref.dtype)


def prepare_params(params):
    """One-time prep (outside the hot path).

    PyTorch nn.Linear weights are (out, in); transpose to (in, out), cast to bf16 and
    zero-pad: the *first* layer's K dim only to the bf16 sublane quantum (16), every
    output/lane dim (and therefore every subsequent layer's K dim) to 128.  Biases stay
    f32 (1, out_p) and are added after the f32 MXU accumulation.
    """
    prepared = []
    prev_pad = None
    for i, (W, b) in enumerate(params):
        out_d, in_d = W.shape
        in_p = _round_up(in_d, SUBLANE_BF16) if i == 0 else prev_pad
        out_p = _round_up(out_d, LANE)
        Wp = jnp.zeros((in_p, out_p), jnp.bfloat16).at[:in_d, :out_d].set(
            W.T.astype(jnp.bfloat16))
        bp = jnp.zeros((1, out_p), jnp.float32).at[0, :out_d].set(b.astype(jnp.float32))
        prepared.append((Wp, bp))
        prev_pad = out_p
    return prepared


def _vmem_needed(tm, din_p, widths, weight_bytes, out_bytes):
    x_tile = tm * din_p * 4 * 2                    # f32 input tile, double-buffered
    o_tile = tm * widths[-1] * out_bytes * 2       # output tile, double-buffered
    act = tm * sum(widths) * 6                     # f32 acc + bf16 inter-layer copies
    return weight_bytes + x_tile + o_tile + act + 4 * 2**20   # compiler-scratch margin


@functools.partial(jax.jit, static_argnames=("out_dim", "out_dtype"))
def mlp_forward(x, prepared, *, out_dim, out_dtype=jnp.float32):
    """x: (B, in_channels) f32.  prepared: output of prepare_params().
    Returns (B, out_dim) in out_dtype (default f32; pass bf16 on v5e if acceptable)."""
    num_layers = len(prepared)
    B, Din = x.shape
    din_p = prepared[0][0].shape[0]
    widths = [int(w.shape[1]) for w, _ in prepared]
    dout_p = widths[-1]
    out_bytes = jnp.dtype(out_dtype).itemsize
    weight_bytes = sum(int(w.size) * 2 + int(b.size) * 4 for w, b in prepared)

    # ---- Batch tiling plan (purely static, derived from shapes). ----
    if _round_up(B, SUBLANE_BF16) <= TM_MAX:
        tm = _round_up(B, SUBLANE_BF16)
        bp = tm
    else:
        tm = TM_MAX
        bp = _round_up(B, tm)
        g = bp // tm
        if g > 1 and g % 2 == 1:              # prefer an even grid for v7x's 2 TCs
            tm2 = tm // 2
            bp2 = _round_up(B, tm2)
            if (bp2 // tm2) % 2 == 0:
                tm, bp = tm2, bp2
    # Shrink TM if the resident-weights + tile footprint would exceed the VMEM budget.
    while tm > SUBLANE_BF16 and _vmem_needed(tm, din_p, widths, weight_bytes, out_bytes) > VMEM_BUDGET:
        tm = max(SUBLANE_BF16, tm // 2)
        bp = _round_up(B, tm)
    needed = _vmem_needed(tm, din_p, widths, weight_bytes, out_bytes)

    if needed > VMEM_BUDGET:
        # TODO(synk): resident weights alone exceed the v7x VMEM budget; a hidden-dim
        # tiled Pallas path (extra grid axis over H chunks + f32 accumulator) is not
        # implemented, so fall back to plain XLA matmuls (correct on all generations).
        h = x.astype(jnp.bfloat16)
        for i, (Wp, bv) in enumerate(prepared):
            Wk = Wp[:h.shape[1], :] if Wp.shape[0] != h.shape[1] else Wp
            h = jnp.dot(h, Wk, preferred_element_type=jnp.float32) + bv
            if i < num_layers - 1:
                h = jnp.maximum(h, 0.0).astype(jnp.bfloat16)
        return h[:B, :out_dim].astype(out_dtype)

    # Pad x only when required (zero rows/cols; padded rows are sliced off below,
    # padded feature columns hit zero weight rows so they contribute nothing).
    x_in = x
    if Din != din_p or B != bp:
        x_in = jnp.pad(x, ((0, bp - B), (0, din_p - Din)))

    grid = (bp // tm,)
    row_chunks = 2 if tm >= 256 else 1

    cost = pl.CostEstimate(
        flops=2 * bp * sum(int(w.shape[0]) * int(w.shape[1]) for w, _ in prepared),
        transcendentals=0,
        bytes_accessed=int(x_in.size) * 4 + weight_bytes + bp * dout_p * out_bytes,
    )

    # Weights/biases: constant index_map -> keep them VMEM-resident, single-buffered.
    weight_specs = []
    for w, b in prepared:
        weight_specs.append(
            pl.BlockSpec(tuple(w.shape), lambda i: (0, 0), pipeline_mode=pl.Buffered(1)))
        weight_specs.append(
            pl.BlockSpec(tuple(b.shape), lambda i: (0, 0), pipeline_mode=pl.Buffered(1)))
    flat_wb = [a for pair in prepared for a in pair]

    kernel = functools.partial(mlp_kernel, num_layers=num_layers, row_chunks=row_chunks)

    out_p = pl.pallas_call(
        kernel,
        out_shape=jax.ShapeDtypeStruct((bp, dout_p), out_dtype),
        grid_spec=pltpu.PrefetchScalarGridSpec(
            num_scalar_prefetch=0,
            grid=grid,
            in_specs=[pl.BlockSpec((tm, din_p), lambda i: (i, 0))] + weight_specs,
            out_specs=pl.BlockSpec((tm, dout_p), lambda i: (i, 0)),
        ),
        compiler_params=pltpu.CompilerParams(
            dimension_semantics=("parallel",),
            vmem_limit_bytes=int(min(max(needed, VMEM_FLOOR), VMEM_BUDGET)),
        ),
        cost_estimate=cost,
    )(x_in, *flat_wb)

    return out_p[:B, :out_dim]


def init_params(key, in_channels, hidden_layers, out_channels):
    """Deterministic init mirroring nn.Linear shapes (W: (out, in), b: (out,))."""
    params = []
    prev = in_channels
    dims = list(hidden_layers) + [out_channels]
    for d in dims:
        key, kw, kb = jax.random.split(key, 3)
        bound = 1.0 / jnp.sqrt(prev)
        W = jax.random.uniform(kw, (d, prev), jnp.float32, -bound, bound)
        b = jax.random.uniform(kb, (d,), jnp.float32, -bound, bound)
        params.append((W, b))
        prev = d
    return params


def mlp_reference(x, params):
    h = x
    for i, (W, b) in enumerate(params):
        h = h @ W.T + b
        if i < len(params) - 1:
            h = jnp.maximum(h, 0.0)
    return h


if __name__ == "__main__":
    key = jax.random.PRNGKey(0)
    in_channels, hidden_layers, out_channels = 32, [64, 48], 16
    batch = 8

    key, kx = jax.random.split(key)
    x = jax.random.normal(kx, (batch, in_channels), jnp.float32)
    params = init_params(key, in_channels, hidden_layers, out_channels)

    prepared = prepare_params(params)   # hoisted: transpose/pad/cast happens once

    out = mlp_forward(x, prepared, out_dim=out_channels)
    out = jax.block_until_ready(out)

    ref = mlp_reference(x, params)
    assert out.shape == (batch, out_channels)
    # bf16 MXU inputs -> loosened tolerances (f32 accumulation keeps error small).
    assert jnp.allclose(out, ref, atol=5e-2, rtol=5e-2), float(jnp.max(jnp.abs(out - ref)))

    print("KERNEL_OK")
</pallas_src>

<mosaic_0001>
module attributes {stable_mosaic.version = 11 : i64} {
  func.func @mlp_kernel(%arg0: i32, %arg1: memref<16x32xf32, #tpu.memory_space<vmem>>, %arg2: memref<32x128xbf16, #tpu.memory_space<vmem>>, %arg3: memref<1x128xf32, #tpu.memory_space<vmem>>, %arg4: memref<128x128xbf16, #tpu.memory_space<vmem>>, %arg5: memref<1x128xf32, #tpu.memory_space<vmem>>, %arg6: memref<128x128xbf16, #tpu.memory_space<vmem>>, %arg7: memref<1x128xf32, #tpu.memory_space<vmem>>, %arg8: memref<16x128xf32, #tpu.memory_space<vmem>>) attributes {dimension_semantics = [#tpu.dimension_semantics<parallel>], iteration_bounds = array<i64: 1>, scalar_prefetch = 0 : i64, scratch_operands = 0 : i64, tpu.core_type = #tpu.core_type<tc>, window_params = [{transform_indices = @transform_0, window_bounds = array<i64: 16, 32>}, {pipeline_mode = #tpu.pipeline_mode<synchronous>, transform_indices = @transform_1, window_bounds = array<i64: 32, 128>}, {pipeline_mode = #tpu.pipeline_mode<synchronous>, transform_indices = @transform_2, window_bounds = array<i64: 1, 128>}, {pipeline_mode = #tpu.pipeline_mode<synchronous>, transform_indices = @transform_3, window_bounds = array<i64: 128, 128>}, {pipeline_mode = #tpu.pipeline_mode<synchronous>, transform_indices = @transform_4, window_bounds = array<i64: 1, 128>}, {pipeline_mode = #tpu.pipeline_mode<synchronous>, transform_indices = @transform_5, window_bounds = array<i64: 128, 128>}, {pipeline_mode = #tpu.pipeline_mode<synchronous>, transform_indices = @transform_6, window_bounds = array<i64: 1, 128>}, {transform_indices = @transform_7, window_bounds = array<i64: 16, 128>}]} {
    %c0 = arith.constant 0 : index
    %c0_0 = arith.constant 0 : index
    %0 = vector.load %arg1[%c0, %c0_0] : memref<16x32xf32, #tpu.memory_space<vmem>>, vector<16x32xf32>
    %1 = arith.truncf %0 : vector<16x32xf32> to vector<16x32xbf16>
    %c0_1 = arith.constant 0 : index
    %c0_2 = arith.constant 0 : index
    %2 = vector.load %arg2[%c0_1, %c0_2] : memref<32x128xbf16, #tpu.memory_space<vmem>>, vector<32x128xbf16>
    %cst = arith.constant dense<0.000000e+00> : vector<16x128xf32>
    %3 = tpu.matmul %1, %2, %cst {dimension_numbers = #tpu.dot_dimension_numbers<[1], [0], [0], [1], [0, 0, 1, 1], [], []>} : vector<16x32xbf16>, vector<32x128xbf16>, vector<16x128xf32> -> vector<16x128xf32>
    %c0_3 = arith.constant 0 : index
    %c0_4 = arith.constant 0 : index
    %4 = vector.load %arg3[%c0_3, %c0_4] : memref<1x128xf32, #tpu.memory_space<vmem>>, vector<1x128xf32>
    %5 = vector.broadcast %4 : vector<1x128xf32> to vector<16x128xf32>
    %6 = arith.addf %3, %5 : vector<16x128xf32>
    %cst_5 = arith.constant 0.000000e+00 : f32
    %7 = vector.broadcast %cst_5 : f32 to vector<16x128xf32>
    %8 = arith.maximumf %6, %7 : vector<16x128xf32>
    %9 = arith.truncf %8 : vector<16x128xf32> to vector<16x128xbf16>
    %c0_6 = arith.constant 0 : index
    %c0_7 = arith.constant 0 : index
    %10 = vector.load %arg4[%c0_6, %c0_7] : memref<128x128xbf16, #tpu.memory_space<vmem>>, vector<128x128xbf16>
    %cst_8 = arith.constant dense<0.000000e+00> : vector<16x128xf32>
    %11 = tpu.matmul %9, %10, %cst_8 {dimension_numbers = #tpu.dot_dimension_numbers<[1], [0], [0], [1], [0, 0, 1, 1], [], []>} : vector<16x128xbf16>, vector<128x128xbf16>, vector<16x128xf32> -> vector<16x128xf32>
    %c0_9 = arith.constant 0 : index
    %c0_10 = arith.constant 0 : index
    %12 = vector.load %arg5[%c0_9, %c0_10] : memref<1x128xf32, #tpu.memory_space<vmem>>, vector<1x128xf32>
    %13 = vector.broadcast %12 : vector<1x128xf32> to vector<16x128xf32>
    %14 = arith.addf %11, %13 : vector<16x128xf32>
    %cst_11 = arith.constant 0.000000e+00 : f32
    %15 = vector.broadcast %cst_11 : f32 to vector<16x128xf32>
    %16 = arith.maximumf %14, %15 : vector<16x128xf32>
    %17 = arith.truncf %16 : vector<16x128xf32> to vector<16x128xbf16>
    %c0_12 = arith.constant 0 : index
    %c0_13 = arith.constant 0 : index
    %18 = vector.load %arg6[%c0_12, %c0_13] : memref<128x128xbf16, #tpu.memory_space<vmem>>, vector<128x128xbf16>
    %cst_14 = arith.constant dense<0.000000e+00> : vector<16x128xf32>
    %19 = tpu.matmul %17, %18, %cst_14 {dimension_numbers = #tpu.dot_dimension_numbers<[1], [0], [0], [1], [0, 0, 1, 1], [], []>} : vector<16x128xbf16>, vector<128x128xbf16>, vector<16x128xf32> -> vector<16x128xf32>
    %c0_15 = arith.constant 0 : index
    %c0_16 = arith.constant 0 : index
    %20 = vector.load %arg7[%c0_15, %c0_16] : memref<1x128xf32, #tpu.memory_space<vmem>>, vector<1x128xf32>
    %21 = vector.broadcast %20 : vector<1x128xf32> to vector<16x128xf32>
    %22 = arith.addf %19, %21 : vector<16x128xf32>
    %c0_17 = arith.constant 0 : index
    %c0_18 = arith.constant 0 : index
    %23 = vector.load %arg8[%c0_17, %c0_18] : memref<16x128xf32, #tpu.memory_space<vmem>>, vector<16x128xf32>
    tpu.vector_store %arg8[%c0_17, %c0_18], %22 {strides = array<i32>} : memref<16x128xf32, #tpu.memory_space<vmem>>, vector<16x128xf32>,
    return
  }
  func.func @transform_0(%arg0: i32) -> (i32, i32) {
    %c0_i32 = arith.constant 0 : i32
    %c0_i32_0 = arith.constant 0 : i32
    return %arg0, %c0_i32 : i32, i32
  }
  func.func @transform_1(%arg0: i32) -> (i32, i32) {
    %c0_i32 = arith.constant 0 : i32
    %c0_i32_0 = arith.constant 0 : i32
    %c0_i32_1 = arith.constant 0 : i32
    return %c0_i32, %c0_i32_0 : i32, i32
  }
  func.func @transform_2(%arg0: i32) -> (i32, i32) {
    %c0_i32 = arith.constant 0 : i32
    %c0_i32_0 = arith.constant 0 : i32
    %c0_i32_1 = arith.constant 0 : i32
    return %c0_i32, %c0_i32_0 : i32, i32
  }
  func.func @transform_3(%arg0: i32) -> (i32, i32) {
    %c0_i32 = arith.constant 0 : i32
    %c0_i32_0 = arith.constant 0 : i32
    %c0_i32_1 = arith.constant 0 : i32
    return %c0_i32, %c0_i32_0 : i32, i32
  }
  func.func @transform_4(%arg0: i32) -> (i32, i32) {
    %c0_i32 = arith.constant 0 : i32
    %c0_i32_0 = arith.constant 0 : i32
    %c0_i32_1 = arith.constant 0 : i32
    return %c0_i32, %c0_i32_0 : i32, i32
  }
  func.func @transform_5(%arg0: i32) -> (i32, i32) {
    %c0_i32 = arith.constant 0 : i32
    %c0_i32_0 = arith.constant 0 : i32
    %c0_i32_1 = arith.constant 0 : i32
    return %c0_i32, %c0_i32_0 : i32, i32
  }
  func.func @transform_6(%arg0: i32) -> (i32, i32) {
    %c0_i32 = arith.constant 0 : i32
    %c0_i32_0 = arith.constant 0 : i32
    %c0_i32_1 = arith.constant 0 : i32
    return %c0_i32, %c0_i32_0 : i32, i32
  }
  func.func @transform_7(%arg0: i32) -> (i32, i32) {
    %c0_i32 = arith.constant 0 : i32
    %c0_i32_0 = arith.constant 0 : i32
    return %arg0, %c0_i32 : i32, i32
  }
}

</mosaic_0001>

<bundles_post_ra>
// kernel: mlp_forward.1
= control target key start
LH: loop header
LB: loop body
LE: loop exit
PB: predicated region body
PF: predicated region fallthrough
CT: control target
= control target key end

     0   :  { %12 = vsyncpa [#allocation3], 0  ;;  %s626_s0 = inlined_call_operand.vmem [shape: f32[16,32], index: 0, kind: input, shape index: {}]   ;;  %s627_s1 = inlined_call_operand.vmem [shape: bf16[32,128], index: 1, kind: input, shape index: {}]   ;;  %s628_s2 = inlined_call_operand.vmem [shape: f32[1,128], index: 2, kind: input, shape index: {}]   ;;  %s629_s3 = inlined_call_operand.hbm [shape: bf16[128,128], index: 3, kind: input, shape index: {}]   ;;  %s630_s4 = inlined_call_operand.vmem [shape: f32[1,128], index: 4, kind: input, shape index: {}]   ;;  %s631_s5 = inlined_call_operand.hbm [shape: bf16[128,128], index: 5, kind: input, shape index: {}]   ;;  %s632_s6 = inlined_call_operand.vmem [shape: f32[1,128], index: 6, kind: input, shape index: {}]   ;;  %s633_s7 = inlined_call_operand.vmem [shape: f32[16,128], index: 7, kind: output, shape index: {}]  }
   0x1   :  { %13 = vsyncpa [#allocation5], 0  ;;  %s523_s24 = smov [#allocation2]  }
   0x2   :  { %s25_s25 = sshll.u32 %s523_s24, 4  ;;  %s26_s25 = int_to_ptr.vmem [resolvable:$true] %s25_s25 }
   0x3   :  { %s487_s26 = scalar_lea.vmem %s26_s25, 1024  ;;  %p492_p1 = scmp.lt.s32.totalorder %s26_s25, %s26_s25 }
   0x4   :  { %p488_p0 = scmp.ne.s32.totalorder %s26_s25, %s487_s26  ;;  %p493_p2 = scmp.lt.s32.totalorder %s487_s26, %s487_s26 }
   0x6   :  { %p494_p3 = por %p493_p2, %p492_p1 }
   0x8   :  { %p495_p4 = pnand %p494_p3, %p488_p0 }
   0xa   :  { %498 = shalt.err (!%p495_p4)
}
   0xb   :  { %s524_s27 = smov 64   ;;  %s525_s28 = smov 4  }
   0xc   :  { %31 = dma.hbm_to_vmem [thread:$0]  %s629_s3, 1024, %s26_s25, [#allocation3], %s524_s27, %s524_s27, %s525_s28  }
   0xd   :  { %s526_s8 = smov [#allocation4]  }
   0xe   :  { %s39_s9 = sshll.u32 %s526_s8, 4  ;;  %s40_s9 = int_to_ptr.vmem [resolvable:$true] %s39_s9 }
   0xf   :  { %s507_s10 = scalar_lea.vmem %s40_s9, 1024  ;;  %p512_p6 = scmp.lt.s32.totalorder %s40_s9, %s40_s9 }
  0x10   :  { %p508_p5 = scmp.ne.s32.totalorder %s40_s9, %s507_s10  ;;  %p513_p7 = scmp.lt.s32.totalorder %s507_s10, %s507_s10 }
  0x12   :  { %p514_p8 = por %p513_p7, %p512_p6 }
  0x14   :  { %p515_p9 = pnand %p514_p8, %p508_p5 }
  0x16   :  { %518 = shalt.err (!%p515_p9)
}
  0x17   :  { %45 = dma.hbm_to_vmem [thread:$0]  %s631_s5, 1024, %s40_s9, [#allocation5], %s524_s27, %s524_s27, %s525_s28  }
  0x18   :  { %519 = dma.done.wait [#allocation3], 1024  }
  0x19   :  { %520 = vsyncadd [#allocation3], 4294966272 }
  0x1a   :  { %521 = dma.done.wait [#allocation5], 1024  }
  0x1b   :  { %522 = vsyncadd [#allocation5], 4294966272  ;;  %v527_v0 = vmov 0.0   ;;  %vm528_vm0 = vmmov 0   ;;  %v461_v1 = vld [vmem:[%s627_s1 + $0x8] sm:$0xff]   ;;  %v462_v2 = vld [vmem:[%s627_s1] sm:$0xff]  }
  0x1c   :  { %407 = vmatprep.subr.bf16.mxu0 %v527_v0  ;;  %411 = vmatprep.mubr.msk.bf16.mxu0 %vm528_vm0, %v527_v0  ;;  %v55_v3 = vld [vmem:[%s626_s0] sm:$0xff]  ;;  %v56_v4 = vld [vmem:[%s626_s0 + $0x8] sm:$0xff]  ;;  %v463_v5 = vld [vmem:[#allocation2 + $0x38] sm:$0xff]   ;;  %vm81_vm1 = vcmask 261120  }
  0x1d   :  { %415 = vmatprep.subr.bf16.mxu1 %v527_v0  ;;  %431 = vmatprep.mubr.msk.bf16.mxu1 %vm528_vm0, %v527_v0  ;;  %v57_v6 = vpack.c.bf16 %v56_v4, %v55_v3  ;;  %v464_v7 = vld [vmem:[#allocation2 + $0x30] sm:$0xff]   ;;  %v465_v8 = vld [vmem:[#allocation2 + $0x28] sm:$0xff]   ;;  %v466_v9 = vld [vmem:[#allocation2 + $0x20] sm:$0xff]  }
  0x1e   :  { %408 = vmatpush3.bf16.msra.mxu0 %v461_v1  ;;  %416 = vmatpush3.bf16.msra.mxu1 %v463_v5  ;;  %v467_v10 = vld [vmem:[#allocation2 + $0x18] sm:$0xff]   ;;  %v468_v11 = vld [vmem:[#allocation2 + $0x10] sm:$0xff]   ;;  %v469_v12 = vld [vmem:[#allocation2 + $0x8] sm:$0xff]  }
  0x1f   :  { %409 = vmatprep.subr.bf16.mxu0 %v527_v0  ;;  %417 = vmatprep.subr.bf16.mxu1 %v527_v0  ;;  %v470_v13 = vld [vmem:[#allocation2] sm:$0xff]   ;;  %v471_v14 = vld [vmem:[#allocation4 + $0x38] sm:$0xff]   ;;  %v472_v15 = vld [vmem:[#allocation4 + $0x30] sm:$0xff]  }
  0x20   :  { %v473_v16 = vld [vmem:[#allocation4 + $0x28] sm:$0xff]   ;;  %v474_v17 = vld [vmem:[#allocation4 + $0x20] sm:$0xff]   ;;  %v475_v18 = vld [vmem:[#allocation4 + $0x18] sm:$0xff]  }
  0x21   :  { %v364_v19 = vld [vmem:[%s628_s2] ss:$0 sm:$0xff]  ;;  %v476_v29 = vld [vmem:[#allocation4 + $0x10] sm:$0xff]   ;;  %v477_v30 = vld [vmem:[#allocation4 + $0x8] sm:$0xff]  }
  0x22   :  { %410 = vmatpush3.bf16.msra.mxu0 %v462_v2  ;;  %418 = vmatpush3.bf16.msra.mxu1 %v464_v7  ;;  %v478_v31 = vld [vmem:[#allocation4] sm:$0xff]  }
  0x23   :  { %435 = vmatprep.subr.bf16.mxu0 %v527_v0  ;;  %419 = vmatprep.subr.bf16.mxu1 %v527_v0  ;;  %v368_v32 = vld [vmem:[%s630_s4] ss:$0 sm:$0xff] }
  0x24   :  { %v377_v42 = vld [vmem:[%s632_s6] ss:$0 sm:$0xff] }
  0x25   :  { %412 = vmatmul.mubr.msk.bf16.vlgmr.msra.gmra.mxu0 %vm81_vm1, %v57_v6 }
  0x26   :  { %451 = vmatprep.mubr.msk.bf16.mxu0 %vm528_vm0, %v527_v0  ;;  %420 = vmatpush3.bf16.msra.mxu1 %v465_v8 }
  0x27   :  { %421 = vmatprep.subr.bf16.mxu1 %v527_v0  ;;  %436 = vmatpush3.bf16.msra.mxu0 %v471_v14 }
  0x28   :  { %437 = vmatprep.subr.bf16.mxu0 %v527_v0 }
  0x2a   :  { %422 = vmatpush3.bf16.msra.mxu1 %v466_v9 }
  0x2b   :  { %423 = vmatprep.subr.bf16.mxu1 %v527_v0  ;;  %438 = vmatpush3.bf16.msra.mxu0 %v472_v15 }
  0x2c   :  { %439 = vmatprep.subr.bf16.mxu0 %v527_v0 }
  0x2e   :  { %424 = vmatpush3.bf16.msra.mxu1 %v467_v10 }
  0x2f   :  { %425 = vmatprep.subr.bf16.mxu1 %v527_v0  ;;  %440 = vmatpush3.bf16.msra.mxu0 %v473_v16 }
  0x30   :  { %441 = vmatprep.subr.bf16.mxu0 %v527_v0 }
  0x32   :  { %426 = vmatpush3.bf16.msra.mxu1 %v468_v11 }
  0x33   :  { %427 = vmatprep.subr.bf16.mxu1 %v527_v0  ;;  %442 = vmatpush3.bf16.msra.mxu0 %v474_v17 }
  0x34   :  { %443 = vmatprep.subr.bf16.mxu0 %v527_v0 }
  0x36   :  { %428 = vmatpush3.bf16.msra.mxu1 %v469_v12 }
  0x37   :  { %429 = vmatprep.subr.bf16.mxu1 %v527_v0  ;;  %444 = vmatpush3.bf16.msra.mxu0 %v475_v18 }
  0x38   :  { %445 = vmatprep.subr.bf16.mxu0 %v527_v0 }
  0x3a   :  { %430 = vmatpush3.bf16.msra.mxu1 %v470_v13 }
  0x3b   :  { %446 = vmatpush3.bf16.msra.mxu0 %v476_v29 }
  0x3c   :  { %447 = vmatprep.subr.bf16.mxu0 %v527_v0 }
  0x3f   :  { %448 = vmatpush3.bf16.msra.mxu0 %v477_v30 }
  0x40   :  { %449 = vmatprep.subr.bf16.mxu0 %v527_v0 }
  0x43   :  { %450 = vmatpush3.bf16.msra.mxu0 %v478_v31 }
  0xe5   :  { %v119_v20 = vpop.f32.mrf.mxu0 }
  0xe6   :  { %v120_v22 = vadd.f32 %v364_v19, %v119_v20 }
  0xe7   :  { %v413_v21 = vpop.f32.mrf.mxu0 }
  0xe8   :  { %v126_v26 = vmax.f32 %v120_v22, 0.0 }
  0xe9   :  { %v122_v23 = vpop.f32.mrf.mxu0 }
  0xea   :  { %v123_v24 = vadd.f32 %v364_v19, %v122_v23 }
  0xeb   :  { %v414_v25 = vpop.f32.mrf.mxu0 }
  0xec   :  { %v127_v27 = vmax.f32 %v123_v24, 0.0 }
  0xee   :  { %v128_v28 = vpack.c.bf16 %v127_v27, %v126_v26 }
  0xf0   :  { %432 = vmatmul.mubr.bf16.vlgmr.msra.gmra.mxu1 %v128_v28 }
 0x1b0   :  { %v234_v33 = vpop.f32.mrf.mxu1 }
 0x1b1   :  { %v235_v35 = vadd.f32 %v368_v32, %v234_v33 }
 0x1b2   :  { %v433_v34 = vpop.f32.mrf.mxu1 }
 0x1b3   :  { %v241_v39 = vmax.f32 %v235_v35, 0.0 }
 0x1b4   :  { %v237_v36 = vpop.f32.mrf.mxu1 }
 0x1b5   :  { %v238_v37 = vadd.f32 %v368_v32, %v237_v36 }
 0x1b6   :  { %v434_v38 = vpop.f32.mrf.mxu1 }
 0x1b7   :  { %v242_v40 = vmax.f32 %v238_v37, 0.0 }
 0x1b9   :  { %v243_v41 = vpack.c.bf16 %v242_v40, %v241_v39 }
 0x1bb   :  { %452 = vmatmul.mubr.bf16.vlgmr.msra.gmra.mxu0 %v243_v41 }
 0x27b   :  { %v349_v43 = vpop.f32.mrf.mxu0 }
 0x27c   :  { %v350_v44 = vadd.f32 %v377_v42, %v349_v43 }
 0x27d   :  { %v453_v45 = vpop.f32.mrf.mxu0 }
 0x27e   :  { %356 = vst [vmem:[%s633_s7] sm:$0xff] %v350_v44 }
 0x27f   :  { %v352_v46 = vpop.f32.mrf.mxu0 }
 0x280   :  { %v353_v47 = vadd.f32 %v377_v42, %v352_v46 }
 0x281   :  { %v454_v48 = vpop.f32.mrf.mxu0 }
 0x282   :  { %357 = vst [vmem:[%s633_s7 + $0x8] sm:$0xff] %v353_v47 }
 0x283   :  { %362 = vsyncpa [#allocation3], 1 }
 0x284   :  { %363 = vsyncpa [#allocation5], 1 }

</bundles_post_ra>
